<compile_context>
chip_gen: v7x
topology: tpu7x:2x2x1
jax: 0.10.0
libtpu: 0.0.40
codegen_flags: <defaults>
</compile_context>

<pallas_src>
import numpy as np
import jax
import jax.numpy as jnp
from jax import lax
from jax.experimental import pallas as pl
from jax.experimental.pallas import tpu as pltpu

GENRES = ['bc', 'bn', 'mz', 'nw', 'pt', 'tc', 'wb']
STOI = {g: i + 1 for i, g in enumerate(GENRES)}   # 0 reserved for unknown / padding

# Tuning knobs (conservative across v5e / v6e / v7x).
MIN_PALLAS_N = 1024          # below this, jnp.take is cheaper than a kernel launch
SINGLE_STEP_MAX_N = 65536    # (D=20) output ~5.3 MiB: fits v5e 16 MiB scoped VMEM
DEFAULT_TILE_N = 8192        # per-step output tile = 20*8192*4 = 640 KiB


# ----------------------------------------------------------------------------
# Kernel: embedding gather as tableT(D,V) @ onehot(V,tile_n)  -> (D, tile_n)
# N sits on the 128-lane axis: lane-dense index load, lane-dense output store.
# ----------------------------------------------------------------------------
def _genre_embed_kernel(idx_ref, table_t_ref, out_ref):
    idx = idx_ref[...]                                            # (1, tile_n) int32
    tile_n = idx_ref.shape[1]
    vocab = table_t_ref.shape[1]
    pos = lax.broadcasted_iota(jnp.int32, (vocab, tile_n), 0)     # row id = vocab id
    onehot = (pos == idx).astype(jnp.float32)                     # (V, tile_n)
    # f32 everywhere: one-hot matmul selects rows exactly (bit-parity with take).
    out_ref[...] = jnp.dot(table_t_ref[...], onehot,
                           preferred_element_type=jnp.float32)    # (D, tile_n)


def genre_embed(indices, table, *, tile_n=DEFAULT_TILE_N,
                min_pallas_n=MIN_PALLAS_N, single_step_max_n=SINGLE_STEP_MAX_N):
    """Embedding table lookup: (N,) int32 ids, (V, D) table -> (N, D) float32."""
    n = int(indices.shape[0])
    v, d = table.shape
    indices = indices.astype(jnp.int32)

    # Tiny batches: the 9-label coref path moves ~720 B; launch overhead would
    # dominate.  Let XLA fuse a gather into the consumer instead.
    if n < min_pallas_n:
        return jnp.take(table, indices, axis=0)

    assert tile_n % 128 == 0, "tile_n must be lane-aligned (multiple of 128)"
    idx_row = indices.reshape(1, n)          # lane-dense index row
    table_t = jnp.transpose(table)           # (D, V) once, host-side (640 B)
    cost = pl.CostEstimate(flops=2 * n * v * d, transcendentals=0,
                           bytes_accessed=4 * n * (1 + d) + 4 * v * d)

    if n <= single_step_max_n:
        # Whole lookup in one grid step: no per-step overhead, one MXU matmul,
        # one lane-dense (D, N) store.  Full-array blocks are exempt from the
        # (8,128) divisibility rule, so no padding needed.
        out_t = pl.pallas_call(
            _genre_embed_kernel,
            out_shape=jax.ShapeDtypeStruct((d, n), jnp.float32),
            cost_estimate=cost,
        )(idx_row, table_t)
        return out_t.T

    # Large-batch tiled path: big lane-dense tiles amortize the ~0.35 us/step
    # overhead; >= 2 steps + "parallel" lets v7x shard rows across both cores.
    grid = (pl.cdiv(n, tile_n),)
    out_t = pl.pallas_call(
        _genre_embed_kernel,
        out_shape=jax.ShapeDtypeStruct((d, n), jnp.float32),
        grid=grid,
        in_specs=[
            pl.BlockSpec((1, tile_n), lambda i: (0, i)),   # lane-dense index row
            pl.BlockSpec((d, v), lambda i: (0, 0)),        # table resident across steps
        ],
        out_specs=pl.BlockSpec((d, tile_n), lambda i: (0, i)),
        compiler_params=pltpu.CompilerParams(dimension_semantics=("parallel",)),
        cost_estimate=cost,
    )(idx_row, table_t)
    return out_t.T


# ----------------------------------------------------------------------------
# Genre module glue (host-side stoi + eval-mode dropout)
# ----------------------------------------------------------------------------
def genre_stoi(labels):
    """Locate embedding id for each genre (unknown -> 0).  Host-side Python."""
    return np.array([STOI.get(g, 0) for g in labels], dtype=np.int32)


def genre_forward(labels, table):
    """Full Genre.forward: stoi -> embedding lookup -> dropout (identity, eval)."""
    # TODO(synk): Dropout(0.2) is identity in eval mode; train-mode dropout would
    # use pltpu.prng_seed + pltpu.stateful_bernoulli inside the kernel.
    indices = jnp.asarray(genre_stoi(labels))
    return genre_embed(indices, table)


def init_genre_table(key, genre_dim=20):
    """nn.Embedding(len(genres)+1, genre_dim, padding_idx=0): row 0 is zeros."""
    table = 0.1 * jax.random.normal(key, (len(GENRES) + 1, genre_dim), jnp.float32)
    return table.at[0].set(0.0)


# ----------------------------------------------------------------------------
if __name__ == "__main__":
    genre_dim = 20
    key = jax.random.PRNGKey(0)
    k_table, k_mid, k_big = jax.random.split(key, 3)
    table = init_genre_table(k_table, genre_dim)

    # 1) Small label batch (module's real usage): exercises the jnp.take bypass,
    #    including unknown-genre -> zero vector semantics.
    labels = ['bc', 'nw', 'tc', 'unknown_genre', 'wb', 'mz', 'pt', 'bn', 'bc']
    out = jax.block_until_ready(genre_forward(labels, table))
    idx_small = jnp.asarray(genre_stoi(labels))
    ref = jnp.take(table, idx_small, axis=0)
    np.testing.assert_allclose(np.asarray(out), np.asarray(ref), rtol=1e-6, atol=1e-6)
    assert out.shape == (len(labels), genre_dim)
    assert np.all(np.asarray(out)[3] == 0.0)               # unknown genre -> zeros

    # 2) Mid batch: single-grid-step Pallas path (lane-dense (D, N) slab).
    n_mid = 1536
    idx_mid = jax.random.randint(k_mid, (n_mid,), 0, len(GENRES) + 1, jnp.int32)
    out_mid = jax.block_until_ready(genre_embed(idx_mid, table))
    ref_mid = jnp.take(table, idx_mid, axis=0)
    np.testing.assert_allclose(np.asarray(out_mid), np.asarray(ref_mid),
                               rtol=1e-6, atol=1e-6)
    assert out_mid.shape == (n_mid, genre_dim)

    # 3) Larger batch, NOT a multiple of tile_n: exercises the tiled grid path
    #    (>= 2 parallel steps) and the ragged last tile's masked writeback.
    n_big = 5000
    idx_big = jax.random.randint(k_big, (n_big,), 0, len(GENRES) + 1, jnp.int32)
    out_big = jax.block_until_ready(
        genre_embed(idx_big, table, tile_n=2048, single_step_max_n=2048))
    ref_big = jnp.take(table, idx_big, axis=0)
    np.testing.assert_allclose(np.asarray(out_big), np.asarray(ref_big),
                               rtol=1e-6, atol=1e-6)
    assert out_big.shape == (n_big, genre_dim)

    print("KERNEL_OK")
</pallas_src>

<mosaic_0001>
module attributes {stable_mosaic.version = 11 : i64} {
  func.func @_genre_embed_kernel(%arg0: memref<1x1536xi32, #tpu.memory_space<vmem>>, %arg1: memref<20x8xf32, #tpu.memory_space<vmem>>, %arg2: memref<20x1536xf32, #tpu.memory_space<vmem>>) attributes {dimension_semantics = [], scalar_prefetch = 0 : i64, scratch_operands = 0 : i64, tpu.core_type = #tpu.core_type<tc>} {
    %c0 = arith.constant 0 : index
    %c0_0 = arith.constant 0 : index
    %0 = vector.load %arg0[%c0, %c0_0] : memref<1x1536xi32, #tpu.memory_space<vmem>>, vector<1x1536xi32>
    %1 = tpu.iota {dimensions = array<i32: 0>} : vector<8x1536xi32>
    %2 = vector.broadcast %0 : vector<1x1536xi32> to vector<8x1536xi32>
    %3 = arith.cmpi eq, %1, %2 : vector<8x1536xi32>
    %4 = arith.extui %3 : vector<8x1536xi1> to vector<8x1536xi32>
    %5 = arith.sitofp %4 : vector<8x1536xi32> to vector<8x1536xf32>
    %c0_1 = arith.constant 0 : index
    %c0_2 = arith.constant 0 : index
    %6 = vector.load %arg1[%c0_1, %c0_2] : memref<20x8xf32, #tpu.memory_space<vmem>>, vector<20x8xf32>
    %cst = arith.constant dense<0.000000e+00> : vector<20x1536xf32>
    %7 = tpu.matmul %6, %5, %cst {dimension_numbers = #tpu.dot_dimension_numbers<[1], [0], [0], [1], [0, 0, 1, 1], [], []>} : vector<20x8xf32>, vector<8x1536xf32>, vector<20x1536xf32> -> vector<20x1536xf32>
    %c0_3 = arith.constant 0 : index
    %c0_4 = arith.constant 0 : index
    %8 = vector.load %arg2[%c0_3, %c0_4] : memref<20x1536xf32, #tpu.memory_space<vmem>>, vector<20x1536xf32>
    tpu.vector_store %arg2[%c0_3, %c0_4], %7 {strides = array<i32>} : memref<20x1536xf32, #tpu.memory_space<vmem>>, vector<20x1536xf32>,
    return
  }
}

</mosaic_0001>

<bundles_post_ra>
// kernel: tpu_custom_call.1
= control target key start
LH: loop header
LB: loop body
LE: loop exit
PB: predicated region body
PF: predicated region fallthrough
CT: control target
= control target key end

     0   :  { %v14_v0 = vlaneseq  ;;  %v734_v1 = vmov 0.0   ;;  %s839_s0 = inlined_call_operand.vmem [shape: s32[1,1536], index: 0, kind: input, shape index: {}]   ;;  %s840_s1 = inlined_call_operand.vmem [shape: f32[20,8], index: 1, kind: input, shape index: {}]   ;;  %s841_s2 = inlined_call_operand.hbm [shape: f32[20,1536], index: 2, kind: output, shape index: {}]  }
   0x1   :  { %177 = vmatprep.mubr.f32.mxu0 %v734_v1  ;;  %260 = vmatprep.mubr.f32.mxu1 %v734_v1 }
   0x2   :  { %7 = vsyncpa [#allocation3], 0  ;;  %v756_v2 = vshrl.u32 %v14_v0, 7  ;;  %v12_v3 = vld [vmem:[%s839_s0] sm:$0xff]  ;;  %vm103_vm0 = vcmask 64512   ;;  %v735_v22 = vmov 1.0  }
   0x3   :  { %v13_v20 = vld [vmem:[%s839_s0 + $0x8] sm:$0xf]  ;;  %v100_v21 = vld [vmem:[%s840_s1] sm:$0xff]  ;;  %v102_v26 = vld [vmem:[%s840_s1 + $0x10] sm:$0xf] }
   0x4   :  { %v22_v4 = vsub.s32 1, %v756_v2  ;;  %v30_v5 = vsub.s32 3, %v756_v2  ;;  %v18_v6 = vsub.s32 0, %v756_v2  ;;  %v26_v7 = vsub.s32 2, %v756_v2  ;;  %v101_v25 = vld [vmem:[%s840_s1 + $0x8] sm:$0xff]  ;;  %s736_s1 = smov [#allocation2]  }
   0x5   :  { %v38_v8 = vsub.s32 5, %v756_v2  ;;  %v46_v9 = vsub.s32 7, %v756_v2  ;;  %v34_v10 = vsub.s32 4, %v756_v2  ;;  %v42_v11 = vsub.s32 6, %v756_v2  ;;  %s652_s18 = sshll.u32 %s736_s1, 4  ;;  %s653_s18 = int_to_ptr.vmem [resolvable:$true] %s652_s18 }
   0x6   :  { %v23_v12 = vrot.slane %v12_v3, %v22_v4  ;;  %v31_v13 = vrot.slane %v12_v3, %v30_v5  ;;  %v19_v14 = vrot.slane %v12_v3, %v18_v6  ;;  %v27_v15 = vrot.slane %v12_v3, %v26_v7  ;;  %s710_s19 = scalar_lea.vmem %s653_s18, 4608  ;;  %p715_p1 = scmp.lt.s32.totalorder %s653_s18, %s653_s18 }
   0x7   :  { %v39_v16 = vrot.slane %v12_v3, %v38_v8  ;;  %v47_v17 = vrot.slane %v12_v3, %v46_v9  ;;  %v35_v18 = vrot.slane %v12_v3, %v34_v10  ;;  %v43_v19 = vrot.slane %v12_v3, %v42_v11  ;;  %p711_p0 = scmp.ne.s32.totalorder %s653_s18, %s710_s19  ;;  %p716_p2 = scmp.lt.s32.totalorder %s710_s19, %s710_s19 }
   0x8   :  { %vm65_vm1 = vcmp.eq.s32.totalorder %v756_v2, %v23_v12  ;;  %vm67_vm2 = vcmp.eq.s32.totalorder %v756_v2, %v31_v13  ;;  %vm64_vm3 = vcmp.eq.s32.totalorder %v756_v2, %v19_v14  ;;  %vm66_vm4 = vcmp.eq.s32.totalorder %v756_v2, %v27_v15 }
   0x9   :  { %675 = vmatprep.subr.msk.mxu0 %vm65_vm1, %v735_v22  ;;  %680 = vmatprep.subr.msk.mxu1 %vm67_vm2, %v735_v22  ;;  %vm69_vm5 = vcmp.eq.s32.totalorder %v756_v2, %v39_v16  ;;  %vm71_vm6 = vcmp.eq.s32.totalorder %v756_v2, %v47_v17  ;;  %vm68_vm7 = vcmp.eq.s32.totalorder %v756_v2, %v35_v18  ;;  %p717_p3 = por %p716_p2, %p715_p1 }
   0xa   :  { %676 = vmatpush1.msk.msra.mxu0 %vm64_vm3, %v735_v22  ;;  %681 = vmatpush1.msk.msra.mxu1 %vm66_vm4, %v735_v22  ;;  %vm70_vm8 = vcmp.eq.s32.totalorder %v756_v2, %v43_v19  ;;  %v55_v23 = vrot.slane %v13_v20, %v22_v4  ;;  %v63_v24 = vrot.slane %v13_v20, %v30_v5 }
   0xb   :  { %677 = vmatmul.mubr.msk.f32.vlgmr.msra.gmra.mrb[0].mxu0 %vm103_vm0, %v100_v21  ;;  %682 = vmatmul.mubr.msk.f32.vlgmr.msra.gmra.mrb[0].mxu1 %vm103_vm0, %v100_v21  ;;  %v51_v27 = vrot.slane %v13_v20, %v18_v6  ;;  %v59_v28 = vrot.slane %v13_v20, %v26_v7  ;;  %p718_p4 = pnand %p717_p3, %p711_p0 }
   0xc   :  { %685 = vmatprep.subr.msk.mxu0 %vm69_vm5, %v735_v22  ;;  %690 = vmatprep.subr.msk.mxu1 %vm71_vm6, %v735_v22  ;;  %vm73_vm9 = vcmp.eq.s32.totalorder %v756_v2, %v55_v23  ;;  %vm75_vm10 = vcmp.eq.s32.totalorder %v756_v2, %v63_v24 }
   0xd   :  { %686 = vmatpush1.msk.msra.mxu0 %vm68_vm7, %v735_v22  ;;  %691 = vmatpush1.msk.msra.mxu1 %vm70_vm8, %v735_v22  ;;  %vm72_vm11 = vcmp.eq.s32.totalorder %v756_v2, %v51_v27  ;;  %vm74_vm12 = vcmp.eq.s32.totalorder %v756_v2, %v59_v28 }
   0xe   :  { %183 = vmatprep.mubr.f32.mxu0 %v734_v1  ;;  %266 = vmatprep.mubr.f32.mxu1 %v734_v1 }
   0xf   :  { %678 = vmatmul.mubr.msk.f32.gmra.mrb[2].mxu0 %vm103_vm0, %v101_v25  ;;  %683 = vmatmul.mubr.msk.f32.gmra.mrb[2].mxu1 %vm103_vm0, %v101_v25 }
  0x10   :  { %189 = vmatprep.mubr.f32.mxu0 %v734_v1  ;;  %272 = vmatprep.mubr.f32.mxu1 %v734_v1 }
  0x11   :  { %695 = vmatprep.subr.msk.mxu0 %vm73_vm9, %v735_v22  ;;  %700 = vmatprep.subr.msk.mxu1 %vm75_vm10, %v735_v22 }
  0x13   :  { %679 = vmatmul.mubr.msk.f32.gmra.mrb[4].mxu0 %vm103_vm0, %v102_v26  ;;  %684 = vmatmul.mubr.msk.f32.gmra.mrb[4].mxu1 %vm103_vm0, %v102_v26 }
  0x14   :  { %343 = vmatprep.mubr.f32.mxu0 %v734_v1  ;;  %426 = vmatprep.mubr.f32.mxu1 %v734_v1 }
  0x17   :  { %687 = vmatmul.mubr.msk.f32.vlgmr.msra.gmra.mrb[6].mxu0 %vm103_vm0, %v100_v21  ;;  %692 = vmatmul.mubr.msk.f32.vlgmr.msra.gmra.mrb[6].mxu1 %vm103_vm0, %v100_v21 }
  0x18   :  { %696 = vmatpush1.msk.msra.mxu0 %vm72_vm11, %v735_v22  ;;  %701 = vmatpush1.msk.msra.mxu1 %vm74_vm12, %v735_v22 }
  0x19   :  { %349 = vmatprep.mubr.f32.mxu0 %v734_v1  ;;  %432 = vmatprep.mubr.f32.mxu1 %v734_v1 }
  0x1b   :  { %688 = vmatmul.mubr.msk.f32.gmra.mrb[8].mxu0 %vm103_vm0, %v101_v25  ;;  %693 = vmatmul.mubr.msk.f32.gmra.mrb[8].mxu1 %vm103_vm0, %v101_v25 }
  0x1c   :  { %355 = vmatprep.mubr.f32.mxu0 %v734_v1  ;;  %438 = vmatprep.mubr.f32.mxu1 %v734_v1 }
  0x1f   :  { %689 = vmatmul.mubr.msk.f32.gmra.mrb[10].mxu0 %vm103_vm0, %v102_v26  ;;  %694 = vmatmul.mubr.msk.f32.gmra.mrb[10].mxu1 %vm103_vm0, %v102_v26 }
  0x20   :  { %509 = vmatprep.mubr.f32.mxu0 %v734_v1  ;;  %592 = vmatprep.mubr.f32.mxu1 %v734_v1 }
  0x23   :  { %697 = vmatmul.mubr.msk.f32.vlgmr.msra.gmra.mrb[12].mxu0 %vm103_vm0, %v100_v21  ;;  %702 = vmatmul.mubr.msk.f32.vlgmr.msra.gmra.mrb[12].mxu1 %vm103_vm0, %v100_v21 }
  0x24   :  { %515 = vmatprep.mubr.f32.mxu0 %v734_v1  ;;  %598 = vmatprep.mubr.f32.mxu1 %v734_v1 }
  0x27   :  { %698 = vmatmul.mubr.msk.f32.gmra.mrb[14].mxu0 %vm103_vm0, %v101_v25  ;;  %703 = vmatmul.mubr.msk.f32.gmra.mrb[14].mxu1 %vm103_vm0, %v101_v25 }
  0x28   :  { %521 = vmatprep.mubr.f32.mxu0 %v734_v1  ;;  %604 = vmatprep.mubr.f32.mxu1 %v734_v1 }
  0x2b   :  { %699 = vmatmul.mubr.msk.f32.gmra.mrb[16].mxu0 %vm103_vm0, %v102_v26  ;;  %704 = vmatmul.mubr.msk.f32.gmra.mrb[16].mxu1 %vm103_vm0, %v102_v26 }
  0xde   :  { %v179_v29 = vpop.f32.mrb[0].mxu0  ;;  %v262_v30 = vpop.f32.mrb[0].mxu1 }
  0xdf   :  { %611 = vst [vmem:[#allocation2] sm:$0xff] %v179_v29  ;;  %613 = vst [vmem:[#allocation2 + $0x10] sm:$0xff] %v262_v30  ;;  %v181_v31 = vpop.f32.mrb[1].mxu0  ;;  %v264_v32 = vpop.f32.mrb[1].mxu1 }
  0xe0   :  { %612 = vst [vmem:[#allocation2 + $0x8] sm:$0xff] %v181_v31  ;;  %614 = vst [vmem:[#allocation2 + $0x18] sm:$0xff] %v264_v32 }
  0xe2   :  { %v185_v33 = vpop.f32.mrb[2].mxu0  ;;  %v268_v34 = vpop.f32.mrb[2].mxu1 }
  0xe3   :  { %623 = vst [vmem:[#allocation2 + $0x60] sm:$0xff] %v185_v33  ;;  %625 = vst [vmem:[#allocation2 + $0x70] sm:$0xff] %v268_v34  ;;  %v187_v35 = vpop.f32.mrb[3].mxu0  ;;  %v270_v36 = vpop.f32.mrb[3].mxu1 }
  0xe4   :  { %624 = vst [vmem:[#allocation2 + $0x68] sm:$0xff] %v187_v35  ;;  %626 = vst [vmem:[#allocation2 + $0x78] sm:$0xff] %v270_v36 }
  0xe6   :  { %v191_v37 = vpop.f32.mrb[4].mxu0  ;;  %v274_v38 = vpop.f32.mrb[4].mxu1 }
  0xe7   :  { %635 = vst [vmem:[#allocation2 + $0xc0] sm:$0xf] %v191_v37  ;;  %637 = vst [vmem:[#allocation2 + $0xd0] sm:$0xf] %v274_v38  ;;  %v193_v39 = vpop.f32.mrb[5].mxu0  ;;  %v276_v40 = vpop.f32.mrb[5].mxu1 }
  0xe8   :  { %636 = vst [vmem:[#allocation2 + $0xc8] sm:$0xf] %v193_v39  ;;  %638 = vst [vmem:[#allocation2 + $0xd8] sm:$0xf] %v276_v40 }
  0xea   :  { %v345_v41 = vpop.f32.mrb[6].mxu0  ;;  %v428_v42 = vpop.f32.mrb[6].mxu1 }
  0xeb   :  { %615 = vst [vmem:[#allocation2 + $0x20] sm:$0xff] %v345_v41  ;;  %617 = vst [vmem:[#allocation2 + $0x30] sm:$0xff] %v428_v42  ;;  %v347_v43 = vpop.f32.mrb[7].mxu0  ;;  %v430_v44 = vpop.f32.mrb[7].mxu1 }
  0xec   :  { %616 = vst [vmem:[#allocation2 + $0x28] sm:$0xff] %v347_v43  ;;  %618 = vst [vmem:[#allocation2 + $0x38] sm:$0xff] %v430_v44 }
  0xee   :  { %v351_v45 = vpop.f32.mrb[8].mxu0  ;;  %v434_v46 = vpop.f32.mrb[8].mxu1 }
  0xef   :  { %627 = vst [vmem:[#allocation2 + $0x80] sm:$0xff] %v351_v45  ;;  %629 = vst [vmem:[#allocation2 + $0x90] sm:$0xff] %v434_v46  ;;  %v353_v47 = vpop.f32.mrb[9].mxu0  ;;  %v436_v48 = vpop.f32.mrb[9].mxu1 }
  0xf0   :  { %628 = vst [vmem:[#allocation2 + $0x88] sm:$0xff] %v353_v47  ;;  %630 = vst [vmem:[#allocation2 + $0x98] sm:$0xff] %v436_v48 }
  0xf2   :  { %v357_v49 = vpop.f32.mrb[10].mxu0  ;;  %v440_v50 = vpop.f32.mrb[10].mxu1 }
  0xf3   :  { %639 = vst [vmem:[#allocation2 + $0xe0] sm:$0xf] %v357_v49  ;;  %641 = vst [vmem:[#allocation2 + $0xf0] sm:$0xf] %v440_v50  ;;  %v359_v51 = vpop.f32.mrb[11].mxu0  ;;  %v442_v52 = vpop.f32.mrb[11].mxu1 }
  0xf4   :  { %640 = vst [vmem:[#allocation2 + $0xe8] sm:$0xf] %v359_v51  ;;  %642 = vst [vmem:[#allocation2 + $0xf8] sm:$0xf] %v442_v52 }
  0xf6   :  { %v511_v53 = vpop.f32.mrb[12].mxu0  ;;  %v594_v54 = vpop.f32.mrb[12].mxu1 }
  0xf7   :  { %619 = vst [vmem:[#allocation2 + $0x40] sm:$0xff] %v511_v53  ;;  %621 = vst [vmem:[#allocation2 + $0x50] sm:$0xff] %v594_v54  ;;  %v513_v55 = vpop.f32.mrb[13].mxu0  ;;  %v596_v56 = vpop.f32.mrb[13].mxu1 }
  0xf8   :  { %620 = vst [vmem:[#allocation2 + $0x48] sm:$0xff] %v513_v55  ;;  %622 = vst [vmem:[#allocation2 + $0x58] sm:$0xff] %v596_v56 }
  0xfa   :  { %v517_v57 = vpop.f32.mrb[14].mxu0  ;;  %v600_v58 = vpop.f32.mrb[14].mxu1 }
  0xfb   :  { %631 = vst [vmem:[#allocation2 + $0xa0] sm:$0xff] %v517_v57  ;;  %633 = vst [vmem:[#allocation2 + $0xb0] sm:$0xff] %v600_v58  ;;  %v519_v59 = vpop.f32.mrb[15].mxu0  ;;  %v602_v60 = vpop.f32.mrb[15].mxu1 }
  0xfc   :  { %632 = vst [vmem:[#allocation2 + $0xa8] sm:$0xff] %v519_v59  ;;  %634 = vst [vmem:[#allocation2 + $0xb8] sm:$0xff] %v602_v60 }
  0xfe   :  { %v523_v61 = vpop.f32.mrb[16].mxu0  ;;  %v606_v62 = vpop.f32.mrb[16].mxu1 }
  0xff   :  { %643 = vst [vmem:[#allocation2 + $0x100] sm:$0xf] %v523_v61  ;;  %645 = vst [vmem:[#allocation2 + $0x110] sm:$0xf] %v606_v62  ;;  %v525_v63 = vpop.f32.mrb[17].mxu0  ;;  %v608_v0 = vpop.f32.mrb[17].mxu1 }
 0x100   :  { %644 = vst [vmem:[#allocation2 + $0x108] sm:$0xf] %v525_v63  ;;  %646 = vst [vmem:[#allocation2 + $0x118] sm:$0xf] %v608_v0 }
 0x101   :  { %721 = shalt.err (!%p718_p4)
}
 0x102   :  { %s722_s22 = scalar_lea.hbm %s841_s2, 4608 }
 0x103   :  { %p723_p5 = scmp.ne.s32.totalorder %s841_s2, %s722_s22  ;;  %p726_p6 = scmp.lt.u32.totalorder %s722_s22, %s841_s2 }
 0x105   :  { %p728_p7 = pnand %p726_p6, %p723_p5 }
 0x107   :  { %731 = shalt.err (!%p728_p7)
}
 0x108   :  { %s737_s27 = smov 1536   ;;  %s738_s28 = smov 96  }
 0x109   :  { %658 = dma.vmem_to_hbm [thread:$0]  %s653_s18, 4608, %s841_s2, [#allocation3], %s737_s27, %s737_s27, %s738_s28  }
 0x10a   :  { %732 = dma.done.wait [#allocation3], 4608  }
 0x10b   :  { %733 = vsyncadd [#allocation3], 4294962688 }
 0x10c   :  { %662 = vsyncpa [#allocation3], 1 }

</bundles_post_ra>
